<compile_context>
chip_gen: v7x
topology: tpu7x:2x2x1
jax: 0.10.0
libtpu: 0.0.40
codegen_flags: <defaults>
</compile_context>

<pallas_src>
import math

import jax
import jax.numpy as jnp
from jax.experimental import pallas as pl
from jax.experimental.pallas import tpu as pltpu


# ----------------------------------------------------------------------------
# Pallas kernel: entire NoisyNet forward (3 matmuls + noisy-weight combine +
# ReLUs) for one batch tile; weights are resident across the batch grid.
# ----------------------------------------------------------------------------
def noisy_net_kernel(
    x_ref,
    w1_ref, b1_ref,                                                  # feature Linear
    w2mu_ref, w2sig_ref, e2in_ref, e2out_ref, b2mu_ref, b2sig_ref,   # noisy_layer1
    w3mu_ref, w3sig_ref, e3in_ref, e3out_ref, b3mu_ref, b3sig_ref,   # noisy_layer2
    o_ref,
):
    f32 = jnp.float32
    bf16 = jnp.bfloat16

    x = x_ref[...].astype(bf16)

    # ---- feature = relu(x @ W1 + b1) ---------------------------------------
    h1 = jnp.dot(x, w1_ref[...], preferred_element_type=f32) + b1_ref[...]
    h1 = jnp.maximum(h1, 0.0)

    # ---- hidden = relu(feature @ (mu + sigma*eps) + (bmu + bsig*beps)) -----
    # Rebuild the rank-1 epsilon from its 1-D factors (saves the full w_eps
    # DMA); combine in f32, cast the combined weight once before the dot.
    w2eps = e2in_ref[...] * e2out_ref[...]                           # (256, 128)
    w2 = w2mu_ref[...].astype(f32) + w2sig_ref[...].astype(f32) * w2eps
    b2 = b2mu_ref[...] + b2sig_ref[...] * e2out_ref[...]
    h2 = jnp.dot(h1.astype(bf16), w2.astype(bf16),
                 preferred_element_type=f32) + b2
    h2 = jnp.maximum(h2, 0.0)

    # ---- out = hidden @ (mu + sigma*eps) + (bmu + bsig*beps) ---------------
    w3eps = e3in_ref[...] * e3out_ref[...]                           # (128, out_pad)
    w3 = w3mu_ref[...].astype(f32) + w3sig_ref[...].astype(f32) * w3eps
    b3 = b3mu_ref[...] + b3sig_ref[...] * e3out_ref[...]
    o_ref[...] = jnp.dot(h2.astype(bf16), w3.astype(bf16),
                         preferred_element_type=f32) + b3


# ----------------------------------------------------------------------------
# Wrapper: batch grid, resident-weight BlockSpecs, lane-dense padded output.
# ----------------------------------------------------------------------------
def noisy_net_forward(x, params, *, block_b=256):
    (w1, b1,
     w2mu, w2sig, e2in, e2out, b2mu, b2sig,
     w3mu, w3sig, e3in, e3out, b3mu, b3sig) = params

    B, in_dim = x.shape
    out_dim = b3mu.shape[-1]

    # Lane-dense output: pad the last layer to a multiple of 128 output
    # columns; padded columns compute to exactly 0 and are sliced off.
    # (In a hot loop, pre-pad the parameters once instead of per call.)
    out_pad = ((out_dim + 127) // 128) * 128
    pad = out_pad - out_dim
    if pad:
        w3mu = jnp.pad(w3mu, ((0, 0), (0, pad)))
        w3sig = jnp.pad(w3sig, ((0, 0), (0, pad)))
        e3out = jnp.pad(e3out, ((0, 0), (0, pad)))
        b3mu = jnp.pad(b3mu, ((0, 0), (0, pad)))
        b3sig = jnp.pad(b3sig, ((0, 0), (0, pad)))

    weights = (w1, b1,
               w2mu, w2sig, e2in, e2out, b2mu, b2sig,
               w3mu, w3sig, e3in, e3out, b3mu, b3sig)

    # Batch tile: multiples of 8 (sublane), up to block_b (256 feeds the
    # 2x256 MXU on v6e/v7x).  Tiny batches fall back to a single block.
    tb = min(block_b, B)
    if tb != B and tb % 8 != 0:
        tb = B
    grid = (pl.cdiv(B, tb),)

    def act_spec(cols):
        return pl.BlockSpec((tb, cols), lambda i: (i, 0))

    def resident_spec(a):
        # Same block every grid step -> loaded once, stays in VMEM.
        return pl.BlockSpec(a.shape, lambda i: (0, 0))

    flops = 2 * B * (in_dim * 256 + 256 * 128 + 128 * out_pad)
    bytes_accessed = (sum(int(a.size) * a.dtype.itemsize for a in weights)
                      + int(x.size) * x.dtype.itemsize
                      + B * out_pad * 4)

    out = pl.pallas_call(
        noisy_net_kernel,
        out_shape=jax.ShapeDtypeStruct((B, out_pad), jnp.float32),
        grid=grid,
        in_specs=[act_spec(in_dim)] + [resident_spec(a) for a in weights],
        out_specs=act_spec(out_pad),
        compiler_params=pltpu.CompilerParams(
            dimension_semantics=("parallel",)),
        cost_estimate=pl.CostEstimate(
            flops=flops, transcendentals=0, bytes_accessed=bytes_accessed),
    )(x, *weights)

    return out[:, :out_dim]


# ----------------------------------------------------------------------------
# Deterministic parameter construction (mirrors the PyTorch module __init__)
# ----------------------------------------------------------------------------
def _scale_noise(key, size):
    x = jax.random.normal(key, (size,), dtype=jnp.float32)
    return jnp.sign(x) * jnp.sqrt(jnp.abs(x))


def _init_linear(key, in_f, out_f):
    kw, kb = jax.random.split(key)
    r = 1.0 / math.sqrt(in_f)
    w = jax.random.uniform(kw, (out_f, in_f), jnp.float32, -r, r)
    b = jax.random.uniform(kb, (out_f,), jnp.float32, -r, r)
    return w.T.astype(jnp.bfloat16), b.reshape(1, out_f)  # bf16 W^T, f32 bias row


def _init_noisy_linear(key, in_f, out_f, std_init=0.5):
    kwmu, kbmu, kein, keout = jax.random.split(key, 4)
    r = 1.0 / math.sqrt(in_f)
    w_mu = jax.random.uniform(kwmu, (out_f, in_f), jnp.float32, -r, r)
    w_sigma = jnp.full((out_f, in_f), std_init / math.sqrt(in_f), jnp.float32)
    b_mu = jax.random.uniform(kbmu, (out_f,), jnp.float32, -r, r)
    b_sigma = jnp.full((out_f,), std_init / math.sqrt(out_f), jnp.float32)
    eps_in = _scale_noise(kein, in_f)
    eps_out = _scale_noise(keout, out_f)
    # Only the 1-D noise factors are stored; w_eps = outer(eps_out, eps_in)
    # is rebuilt inside the kernel.  eps_out also serves as bias_epsilon.
    return (
        w_mu.T.astype(jnp.bfloat16), w_sigma.T.astype(jnp.bfloat16),  # (in_f, out_f)
        eps_in.reshape(in_f, 1), eps_out.reshape(1, out_f),           # f32 factors
        b_mu.reshape(1, out_f), b_sigma.reshape(1, out_f),            # f32 biases
    )


def init_noisy_net(key, in_dim, out_dim):
    k1, k2, k3 = jax.random.split(key, 3)
    w1, b1 = _init_linear(k1, in_dim, 256)
    n1 = _init_noisy_linear(k2, 256, 128)
    n2 = _init_noisy_linear(k3, 128, out_dim)
    return (w1, b1) + n1 + n2


# ----------------------------------------------------------------------------
# Pure-JAX reference (f32 math on the same stored parameters)
# ----------------------------------------------------------------------------
def noisy_net_reference(x, params):
    (w1, b1,
     w2mu, w2sig, e2in, e2out, b2mu, b2sig,
     w3mu, w3sig, e3in, e3out, b3mu, b3sig) = params
    f32 = jnp.float32
    h1 = jnp.maximum(x @ w1.astype(f32) + b1, 0.0)
    w2 = w2mu.astype(f32) + w2sig.astype(f32) * (e2in * e2out)
    b2 = b2mu + b2sig * e2out
    h2 = jnp.maximum(h1 @ w2 + b2, 0.0)
    w3 = w3mu.astype(f32) + w3sig.astype(f32) * (e3in * e3out)
    b3 = b3mu + b3sig * e3out
    return h2 @ w3 + b3


if __name__ == "__main__":
    key = jax.random.PRNGKey(0)
    k_params, k_x = jax.random.split(key)

    in_dim, out_dim, batch = 16, 8, 8
    params = init_noisy_net(k_params, in_dim, out_dim)
    x = jax.random.normal(k_x, (batch, in_dim), dtype=jnp.float32)

    out = noisy_net_forward(x, params)
    out = jax.block_until_ready(out)

    ref = noisy_net_reference(x, params)
    assert out.shape == (batch, out_dim)
    # bf16 matmul operands with f32 accumulation -> relaxed tolerance.
    assert jnp.allclose(out, ref, atol=2e-2, rtol=2e-2), "mismatch vs reference"

    print("KERNEL_OK")
</pallas_src>

<mosaic_0001>
module attributes {stable_mosaic.version = 11 : i64} {
  func.func @noisy_net_kernel(%arg0: i32, %arg1: memref<8x16xf32, #tpu.memory_space<vmem>>, %arg2: memref<16x256xbf16, #tpu.memory_space<vmem>>, %arg3: memref<1x256xf32, #tpu.memory_space<vmem>>, %arg4: memref<256x128xbf16, #tpu.memory_space<vmem>>, %arg5: memref<256x128xbf16, #tpu.memory_space<vmem>>, %arg6: memref<256x1xf32, #tpu.memory_space<vmem>>, %arg7: memref<1x128xf32, #tpu.memory_space<vmem>>, %arg8: memref<1x128xf32, #tpu.memory_space<vmem>>, %arg9: memref<1x128xf32, #tpu.memory_space<vmem>>, %arg10: memref<128x128xbf16, #tpu.memory_space<vmem>>, %arg11: memref<128x128xbf16, #tpu.memory_space<vmem>>, %arg12: memref<128x1xf32, #tpu.memory_space<vmem>>, %arg13: memref<1x128xf32, #tpu.memory_space<vmem>>, %arg14: memref<1x128xf32, #tpu.memory_space<vmem>>, %arg15: memref<1x128xf32, #tpu.memory_space<vmem>>, %arg16: memref<8x128xf32, #tpu.memory_space<vmem>>) attributes {dimension_semantics = [#tpu.dimension_semantics<parallel>], iteration_bounds = array<i64: 1>, scalar_prefetch = 0 : i64, scratch_operands = 0 : i64, tpu.core_type = #tpu.core_type<tc>, window_params = [{transform_indices = @transform_0, window_bounds = array<i64: 8, 16>}, {pipeline_mode = #tpu.pipeline_mode<synchronous>, transform_indices = @transform_1, window_bounds = array<i64: 16, 256>}, {pipeline_mode = #tpu.pipeline_mode<synchronous>, transform_indices = @transform_2, window_bounds = array<i64: 1, 256>}, {pipeline_mode = #tpu.pipeline_mode<synchronous>, transform_indices = @transform_3, window_bounds = array<i64: 256, 128>}, {pipeline_mode = #tpu.pipeline_mode<synchronous>, transform_indices = @transform_4, window_bounds = array<i64: 256, 128>}, {pipeline_mode = #tpu.pipeline_mode<synchronous>, transform_indices = @transform_5, window_bounds = array<i64: 256, 1>}, {pipeline_mode = #tpu.pipeline_mode<synchronous>, transform_indices = @transform_6, window_bounds = array<i64: 1, 128>}, {pipeline_mode = #tpu.pipeline_mode<synchronous>, transform_indices = @transform_7, window_bounds = array<i64: 1, 128>}, {pipeline_mode = #tpu.pipeline_mode<synchronous>, transform_indices = @transform_8, window_bounds = array<i64: 1, 128>}, {pipeline_mode = #tpu.pipeline_mode<synchronous>, transform_indices = @transform_9, window_bounds = array<i64: 128, 128>}, {pipeline_mode = #tpu.pipeline_mode<synchronous>, transform_indices = @transform_10, window_bounds = array<i64: 128, 128>}, {pipeline_mode = #tpu.pipeline_mode<synchronous>, transform_indices = @transform_11, window_bounds = array<i64: 128, 1>}, {pipeline_mode = #tpu.pipeline_mode<synchronous>, transform_indices = @transform_12, window_bounds = array<i64: 1, 128>}, {pipeline_mode = #tpu.pipeline_mode<synchronous>, transform_indices = @transform_13, window_bounds = array<i64: 1, 128>}, {pipeline_mode = #tpu.pipeline_mode<synchronous>, transform_indices = @transform_14, window_bounds = array<i64: 1, 128>}, {transform_indices = @transform_15, window_bounds = array<i64: 8, 128>}]} {
    %c0 = arith.constant 0 : index
    %c0_0 = arith.constant 0 : index
    %0 = vector.load %arg1[%c0, %c0_0] : memref<8x16xf32, #tpu.memory_space<vmem>>, vector<8x16xf32>
    %1 = arith.truncf %0 : vector<8x16xf32> to vector<8x16xbf16>
    %c0_1 = arith.constant 0 : index
    %c0_2 = arith.constant 0 : index
    %2 = vector.load %arg2[%c0_1, %c0_2] : memref<16x256xbf16, #tpu.memory_space<vmem>>, vector<16x256xbf16>
    %cst = arith.constant dense<0.000000e+00> : vector<8x256xf32>
    %3 = tpu.matmul %1, %2, %cst {dimension_numbers = #tpu.dot_dimension_numbers<[1], [0], [0], [1], [0, 0, 1, 1], [], []>} : vector<8x16xbf16>, vector<16x256xbf16>, vector<8x256xf32> -> vector<8x256xf32>
    %c0_3 = arith.constant 0 : index
    %c0_4 = arith.constant 0 : index
    %4 = vector.load %arg3[%c0_3, %c0_4] : memref<1x256xf32, #tpu.memory_space<vmem>>, vector<1x256xf32>
    %5 = vector.broadcast %4 : vector<1x256xf32> to vector<8x256xf32>
    %6 = arith.addf %3, %5 : vector<8x256xf32>
    %cst_5 = arith.constant 0.000000e+00 : f32
    %7 = vector.broadcast %cst_5 : f32 to vector<8x256xf32>
    %8 = arith.maximumf %6, %7 : vector<8x256xf32>
    %c0_6 = arith.constant 0 : index
    %c0_7 = arith.constant 0 : index
    %9 = vector.load %arg6[%c0_6, %c0_7] : memref<256x1xf32, #tpu.memory_space<vmem>>, vector<256x1xf32>
    %c0_8 = arith.constant 0 : index
    %c0_9 = arith.constant 0 : index
    %10 = vector.load %arg7[%c0_8, %c0_9] : memref<1x128xf32, #tpu.memory_space<vmem>>, vector<1x128xf32>
    %11 = vector.broadcast %9 : vector<256x1xf32> to vector<256x128xf32>
    %12 = vector.broadcast %10 : vector<1x128xf32> to vector<256x128xf32>
    %13 = arith.mulf %11, %12 : vector<256x128xf32>
    %c0_10 = arith.constant 0 : index
    %c0_11 = arith.constant 0 : index
    %14 = vector.load %arg4[%c0_10, %c0_11] : memref<256x128xbf16, #tpu.memory_space<vmem>>, vector<256x128xbf16>
    %15 = arith.extf %14 : vector<256x128xbf16> to vector<256x128xf32>
    %c0_12 = arith.constant 0 : index
    %c0_13 = arith.constant 0 : index
    %16 = vector.load %arg5[%c0_12, %c0_13] : memref<256x128xbf16, #tpu.memory_space<vmem>>, vector<256x128xbf16>
    %17 = arith.extf %16 : vector<256x128xbf16> to vector<256x128xf32>
    %18 = arith.mulf %17, %13 : vector<256x128xf32>
    %19 = arith.addf %15, %18 : vector<256x128xf32>
    %c0_14 = arith.constant 0 : index
    %c0_15 = arith.constant 0 : index
    %20 = vector.load %arg8[%c0_14, %c0_15] : memref<1x128xf32, #tpu.memory_space<vmem>>, vector<1x128xf32>
    %c0_16 = arith.constant 0 : index
    %c0_17 = arith.constant 0 : index
    %21 = vector.load %arg9[%c0_16, %c0_17] : memref<1x128xf32, #tpu.memory_space<vmem>>, vector<1x128xf32>
    %c0_18 = arith.constant 0 : index
    %c0_19 = arith.constant 0 : index
    %22 = vector.load %arg7[%c0_18, %c0_19] : memref<1x128xf32, #tpu.memory_space<vmem>>, vector<1x128xf32>
    %23 = arith.mulf %21, %22 : vector<1x128xf32>
    %24 = arith.addf %20, %23 : vector<1x128xf32>
    %25 = arith.truncf %8 : vector<8x256xf32> to vector<8x256xbf16>
    %26 = arith.truncf %19 : vector<256x128xf32> to vector<256x128xbf16>
    %cst_20 = arith.constant dense<0.000000e+00> : vector<8x128xf32>
    %27 = tpu.matmul %25, %26, %cst_20 {dimension_numbers = #tpu.dot_dimension_numbers<[1], [0], [0], [1], [0, 0, 1, 1], [], []>} : vector<8x256xbf16>, vector<256x128xbf16>, vector<8x128xf32> -> vector<8x128xf32>
    %28 = vector.broadcast %24 : vector<1x128xf32> to vector<8x128xf32>
    %29 = arith.addf %27, %28 : vector<8x128xf32>
    %cst_21 = arith.constant 0.000000e+00 : f32
    %30 = vector.broadcast %cst_21 : f32 to vector<8x128xf32>
    %31 = arith.maximumf %29, %30 : vector<8x128xf32>
    %c0_22 = arith.constant 0 : index
    %c0_23 = arith.constant 0 : index
    %32 = vector.load %arg12[%c0_22, %c0_23] : memref<128x1xf32, #tpu.memory_space<vmem>>, vector<128x1xf32>
    %c0_24 = arith.constant 0 : index
    %c0_25 = arith.constant 0 : index
    %33 = vector.load %arg13[%c0_24, %c0_25] : memref<1x128xf32, #tpu.memory_space<vmem>>, vector<1x128xf32>
    %34 = vector.broadcast %32 : vector<128x1xf32> to vector<128x128xf32>
    %35 = vector.broadcast %33 : vector<1x128xf32> to vector<128x128xf32>
    %36 = arith.mulf %34, %35 : vector<128x128xf32>
    %c0_26 = arith.constant 0 : index
    %c0_27 = arith.constant 0 : index
    %37 = vector.load %arg10[%c0_26, %c0_27] : memref<128x128xbf16, #tpu.memory_space<vmem>>, vector<128x128xbf16>
    %38 = arith.extf %37 : vector<128x128xbf16> to vector<128x128xf32>
    %c0_28 = arith.constant 0 : index
    %c0_29 = arith.constant 0 : index
    %39 = vector.load %arg11[%c0_28, %c0_29] : memref<128x128xbf16, #tpu.memory_space<vmem>>, vector<128x128xbf16>
    %40 = arith.extf %39 : vector<128x128xbf16> to vector<128x128xf32>
    %41 = arith.mulf %40, %36 : vector<128x128xf32>
    %42 = arith.addf %38, %41 : vector<128x128xf32>
    %c0_30 = arith.constant 0 : index
    %c0_31 = arith.constant 0 : index
    %43 = vector.load %arg14[%c0_30, %c0_31] : memref<1x128xf32, #tpu.memory_space<vmem>>, vector<1x128xf32>
    %c0_32 = arith.constant 0 : index
    %c0_33 = arith.constant 0 : index
    %44 = vector.load %arg15[%c0_32, %c0_33] : memref<1x128xf32, #tpu.memory_space<vmem>>, vector<1x128xf32>
    %c0_34 = arith.constant 0 : index
    %c0_35 = arith.constant 0 : index
    %45 = vector.load %arg13[%c0_34, %c0_35] : memref<1x128xf32, #tpu.memory_space<vmem>>, vector<1x128xf32>
    %46 = arith.mulf %44, %45 : vector<1x128xf32>
    %47 = arith.addf %43, %46 : vector<1x128xf32>
    %48 = arith.truncf %31 : vector<8x128xf32> to vector<8x128xbf16>
    %49 = arith.truncf %42 : vector<128x128xf32> to vector<128x128xbf16>
    %cst_36 = arith.constant dense<0.000000e+00> : vector<8x128xf32>
    %50 = tpu.matmul %48, %49, %cst_36 {dimension_numbers = #tpu.dot_dimension_numbers<[1], [0], [0], [1], [0, 0, 1, 1], [], []>} : vector<8x128xbf16>, vector<128x128xbf16>, vector<8x128xf32> -> vector<8x128xf32>
    %51 = vector.broadcast %47 : vector<1x128xf32> to vector<8x128xf32>
    %52 = arith.addf %50, %51 : vector<8x128xf32>
    %c0_37 = arith.constant 0 : index
    %c0_38 = arith.constant 0 : index
    %53 = vector.load %arg16[%c0_37, %c0_38] : memref<8x128xf32, #tpu.memory_space<vmem>>, vector<8x128xf32>
    tpu.vector_store %arg16[%c0_37, %c0_38], %52 {strides = array<i32>} : memref<8x128xf32, #tpu.memory_space<vmem>>, vector<8x128xf32>,
    return
  }
  func.func @transform_0(%arg0: i32) -> (i32, i32) {
    %c0_i32 = arith.constant 0 : i32
    %c0_i32_0 = arith.constant 0 : i32
    return %arg0, %c0_i32 : i32, i32
  }
  func.func @transform_1(%arg0: i32) -> (i32, i32) {
    %c0_i32 = arith.constant 0 : i32
    %c0_i32_0 = arith.constant 0 : i32
    %c0_i32_1 = arith.constant 0 : i32
    return %c0_i32, %c0_i32_0 : i32, i32
  }
  func.func @transform_2(%arg0: i32) -> (i32, i32) {
    %c0_i32 = arith.constant 0 : i32
    %c0_i32_0 = arith.constant 0 : i32
    %c0_i32_1 = arith.constant 0 : i32
    return %c0_i32, %c0_i32_0 : i32, i32
  }
  func.func @transform_3(%arg0: i32) -> (i32, i32) {
    %c0_i32 = arith.constant 0 : i32
    %c0_i32_0 = arith.constant 0 : i32
    %c0_i32_1 = arith.constant 0 : i32
    return %c0_i32, %c0_i32_0 : i32, i32
  }
  func.func @transform_4(%arg0: i32) -> (i32, i32) {
    %c0_i32 = arith.constant 0 : i32
    %c0_i32_0 = arith.constant 0 : i32
    %c0_i32_1 = arith.constant 0 : i32
    return %c0_i32, %c0_i32_0 : i32, i32
  }
  func.func @transform_5(%arg0: i32) -> (i32, i32) {
    %c0_i32 = arith.constant 0 : i32
    %c0_i32_0 = arith.constant 0 : i32
    %c0_i32_1 = arith.constant 0 : i32
    return %c0_i32, %c0_i32_0 : i32, i32
  }
  func.func @transform_6(%arg0: i32) -> (i32, i32) {
    %c0_i32 = arith.constant 0 : i32
    %c0_i32_0 = arith.constant 0 : i32
    %c0_i32_1 = arith.constant 0 : i32
    return %c0_i32, %c0_i32_0 : i32, i32
  }
  func.func @transform_7(%arg0: i32) -> (i32, i32) {
    %c0_i32 = arith.constant 0 : i32
    %c0_i32_0 = arith.constant 0 : i32
    %c0_i32_1 = arith.constant 0 : i32
    return %c0_i32, %c0_i32_0 : i32, i32
  }
  func.func @transform_8(%arg0: i32) -> (i32, i32) {
    %c0_i32 = arith.constant 0 : i32
    %c0_i32_0 = arith.constant 0 : i32
    %c0_i32_1 = arith.constant 0 : i32
    return %c0_i32, %c0_i32_0 : i32, i32
  }
  func.func @transform_9(%arg0: i32) -> (i32, i32) {
    %c0_i32 = arith.constant 0 : i32
    %c0_i32_0 = arith.constant 0 : i32
    %c0_i32_1 = arith.constant 0 : i32
    return %c0_i32, %c0_i32_0 : i32, i32
  }
  func.func @transform_10(%arg0: i32) -> (i32, i32) {
    %c0_i32 = arith.constant 0 : i32
    %c0_i32_0 = arith.constant 0 : i32
    %c0_i32_1 = arith.constant 0 : i32
    return %c0_i32, %c0_i32_0 : i32, i32
  }
  func.func @transform_11(%arg0: i32) -> (i32, i32) {
    %c0_i32 = arith.constant 0 : i32
    %c0_i32_0 = arith.constant 0 : i32
    %c0_i32_1 = arith.constant 0 : i32
    return %c0_i32, %c0_i32_0 : i32, i32
  }
  func.func @transform_12(%arg0: i32) -> (i32, i32) {
    %c0_i32 = arith.constant 0 : i32
    %c0_i32_0 = arith.constant 0 : i32
    %c0_i32_1 = arith.constant 0 : i32
    return %c0_i32, %c0_i32_0 : i32, i32
  }
  func.func @transform_13(%arg0: i32) -> (i32, i32) {
    %c0_i32 = arith.constant 0 : i32
    %c0_i32_0 = arith.constant 0 : i32
    %c0_i32_1 = arith.constant 0 : i32
    return %c0_i32, %c0_i32_0 : i32, i32
  }
  func.func @transform_14(%arg0: i32) -> (i32, i32) {
    %c0_i32 = arith.constant 0 : i32
    %c0_i32_0 = arith.constant 0 : i32
    %c0_i32_1 = arith.constant 0 : i32
    return %c0_i32, %c0_i32_0 : i32, i32
  }
  func.func @transform_15(%arg0: i32) -> (i32, i32) {
    %c0_i32 = arith.constant 0 : i32
    %c0_i32_0 = arith.constant 0 : i32
    return %arg0, %c0_i32 : i32, i32
  }
}

</mosaic_0001>

<bundles_post_ra>
// kernel: tpu_custom_call.1
= control target key start
LH: loop header
LB: loop body
LE: loop exit
PB: predicated region body
PF: predicated region fallthrough
CT: control target
= control target key end

     0   :  { %20 = vsyncpa [#allocation3], 0  ;;  %s1829_s0 = inlined_call_operand.hbm [shape: f32[8,16], index: 0, kind: input, shape index: {}]   ;;  %s1830_s1 = inlined_call_operand.hbm [shape: bf16[16,256], index: 1, kind: input, shape index: {}]   ;;  %s1831_s2 = inlined_call_operand.vmem [shape: f32[1,256], index: 2, kind: input, shape index: {}]   ;;  %s1832_s3 = inlined_call_operand.vmem [shape: bf16[256,128], index: 3, kind: input, shape index: {}]   ;;  %s1833_s4 = inlined_call_operand.vmem [shape: bf16[256,128], index: 4, kind: input, shape index: {}]   ;;  %s1834_s5 = inlined_call_operand.vmem [shape: f32[256,1], index: 5, kind: input, shape index: {}]   ;;  %s1835_s6 = inlined_call_operand.vmem [shape: f32[1,128], index: 6, kind: input, shape index: {}]   ;;  %s1836_s7 = inlined_call_operand.vmem [shape: f32[1,128], index: 7, kind: input, shape index: {}]   ;;  %s1837_s8 = inlined_call_operand.vmem [shape: f32[1,128], index: 8, kind: input, shape index: {}]   ;;  %s1838_s9 = inlined_call_operand.vmem [shape: bf16[128,128], index: 9, kind: input, shape index: {}]   ;;  %s1839_s10 = inlined_call_operand.vmem [shape: bf16[128,128], index: 10, kind: input, shape index: {}]   ;;  %s1840_s11 = inlined_call_operand.vmem [shape: f32[128,1], index: 11, kind: input, shape index: {}]   ;;  %s1841_s12 = inlined_call_operand.vmem [shape: f32[1,128], index: 12, kind: input, shape index: {}]   ;;  %s1842_s13 = inlined_call_operand.vmem [shape: f32[1,128], index: 13, kind: input, shape index: {}]   ;;  %s1843_s14 = inlined_call_operand.vmem [shape: f32[1,128], index: 14, kind: input, shape index: {}]   ;;  %s1844_s15 = inlined_call_operand.hbm [shape: f32[8,128], index: 15, kind: output, shape index: {}]  }
   0x1   :  { %21 = vsyncpa [#allocation6], 0 }
   0x2   :  { %22 = vsyncpa [#allocation4], 0  ;;  %s1309_s18 = smov [#allocation2]   ;;  %s1310_s20 = smov [#allocation5]  }
   0x3   :  { %s29_s19 = sshll.u32 %s1309_s18, 4  ;;  %s38_s21 = sshll.u32 %s1310_s20, 4  ;;  %s30_s19 = int_to_ptr.vmem [resolvable:$true] %s29_s19  ;;  %s1397_s21 = int_to_ptr.vmem [resolvable:$true] %s38_s21 }
   0x4   :  { %s1237_s24 = scalar_lea.hbm %s1829_s0, 128 }
   0x5   :  { %p1238_p0 = scmp.ne.s32.totalorder %s1829_s0, %s1237_s24  ;;  %p1241_p1 = scmp.lt.u32.totalorder %s1237_s24, %s1829_s0 }
   0x7   :  { %p1243_p2 = pnand %p1241_p1, %p1238_p0 }
   0x9   :  { %1246 = shalt.err (!%p1243_p2)
}
   0xa   :  { %s1247_s29 = scalar_lea.vmem %s30_s19, 128  ;;  %p1252_p4 = scmp.lt.s32.totalorder %s30_s19, %s30_s19 }
   0xb   :  { %p1248_p3 = scmp.ne.s32.totalorder %s30_s19, %s1247_s29  ;;  %p1253_p5 = scmp.lt.s32.totalorder %s1247_s29, %s1247_s29 }
   0xd   :  { %p1254_p6 = por %p1253_p5, %p1252_p4 }
   0xf   :  { %p1255_p7 = pnand %p1254_p6, %p1248_p3 }
  0x11   :  { %1258 = shalt.err (!%p1255_p7)
}
  0x12   :  { %32 = dma.hbm_to_vmem [thread:$0]  %s1829_s0, 128, %s30_s19, [#allocation3]  }
  0x13   :  { %s1259_s20 = scalar_lea.hbm %s1830_s1, 256 }
  0x14   :  { %p1260_p8 = scmp.ne.s32.totalorder %s1830_s1, %s1259_s20  ;;  %p1263_p9 = scmp.lt.u32.totalorder %s1259_s20, %s1830_s1 }
  0x16   :  { %p1265_p10 = pnand %p1263_p9, %p1260_p8 }
  0x18   :  { %1268 = shalt.err (!%p1265_p10)
}
  0x19   :  { %s1269_s26 = scalar_lea.vmem %s1397_s21, 256  ;;  %p1274_p12 = scmp.lt.s32.totalorder %s1397_s21, %s1397_s21 }
  0x1a   :  { %p1270_p11 = scmp.ne.s32.totalorder %s1397_s21, %s1269_s26  ;;  %p1275_p13 = scmp.lt.s32.totalorder %s1269_s26, %s1269_s26 }
  0x1c   :  { %p1276_p0 = por %p1275_p13, %p1274_p12 }
  0x1e   :  { %p1277_p1 = pnand %p1276_p0, %p1270_p11 }
  0x20   :  { %1280 = shalt.err (!%p1277_p1)
}
  0x21   :  { %s1311_s0 = smov 128   ;;  %s1312_s19 = smov 8  }
  0x22   :  { %44 = dma.hbm_to_vmem [thread:$0]  %s1830_s1, 256, %s1397_s21, [#allocation6], %s1311_s0, %s1311_s0, %s1312_s19  }
  0x23   :  { %1303 = dma.done.wait [#allocation3], 128  }
  0x24   :  { %1304 = vsyncadd [#allocation3], 4294967168 }
  0x25   :  { %1305 = dma.done.wait [#allocation6], 256  }
  0x26   :  { %1306 = vsyncadd [#allocation6], 4294967040  ;;  %v1313_v0 = vmov 0   ;;  %v167_v1 = vld [vmem:[%s1834_s5 + $0x80] sm:$0xff]  ;;  %v1234_v3 = vld [vmem:[#allocation5 + $0x4] ss:$8 sps:$4 sm:$0xff]   ;;  %v84_v54 = vlaneseq }
  0x27   :  { %1233 = vset.pattern.permute.xlu1 %v1313_v0  ;;  %1232 = vset.pattern.permute.xlu0 %v1313_v0  ;;  %v151_v2 = vld [vmem:[%s1834_s5] sm:$0xff]  ;;  %v1236_v4 = vld [vmem:[#allocation5] ss:$8 sps:$4 sm:$0xff]   ;;  %vm104_vm0 = vcmask 130048   ;;  %v170_v10 = vld [vmem:[%s1834_s5 + $0x98] sm:$0xff]  ;;  %v1314_v45 = vmov 0.0  }
  0x28   :  { %140 = vmatprep.mubr.bf16.mxu0 %v1313_v0  ;;  %266 = vperm.xlu0 %1232, %v167_v1   ;;  %v168_v5 = vld [vmem:[%s1834_s5 + $0x88] sm:$0xff]  ;;  %v78_v7 = vld [vmem:[#allocation2] sm:$0xff]  ;;  %v169_v9 = vld [vmem:[%s1834_s5 + $0x90] sm:$0xff]  ;;  %v1573_v55 = vshrl.u32 %v84_v54, 7  ;;  %vm1315_vm1 = vmmov 0   ;;  %s1316_s22 = smov [#allocation7]  }
  0x29   :  { %186 = vperm.xlu1 %1233, %v151_v2   ;;  %v152_v6 = vld [vmem:[%s1834_s5 + $0x8] sm:$0xff]  ;;  %108 = vmatprep.subr.bf16.mxu0 %v1234_v3  ;;  %v79_v8 = vpack.c.bf16 %v78_v7, %v78_v7  ;;  %v153_v11 = vld [vmem:[%s1834_s5 + $0x10] sm:$0xff]  ;;  %v154_v12 = vld [vmem:[%s1834_s5 + $0x18] sm:$0xff]  ;;  %s924_s23 = sshll.u32 %s1316_s22, 4  ;;  %s925_s23 = int_to_ptr.vmem [resolvable:$true] %s924_s23 }
  0x2a   :  { %109 = vmatpush1.bf16.msra.mxu0 %v1236_v4  ;;  %v171_v13 = vld [vmem:[%s1834_s5 + $0xa0] sm:$0xff]  ;;  %v172_v14 = vld [vmem:[%s1834_s5 + $0xa8] sm:$0xff]  ;;  %v173_v17 = vld [vmem:[%s1834_s5 + $0xb0] sm:$0xff]  ;;  %v1576_v56 = vsub.s32 0, %v1573_v55  ;;  %s1281_s24 = scalar_lea.vmem %s925_s23, 128  ;;  %p1286_p3 = scmp.lt.s32.totalorder %s925_s23, %s925_s23 }
  0x2b   :  { %v155_v15 = vld [vmem:[%s1834_s5 + $0x20] sm:$0xff]  ;;  %v156_v16 = vld [vmem:[%s1834_s5 + $0x28] sm:$0xff]  ;;  %v174_v18 = vld [vmem:[%s1834_s5 + $0xb8] sm:$0xff]  ;;  %1204 = vmatprep.subr.bf16.mxu0 %v1314_v45  ;;  %p1282_p2 = scmp.ne.s32.totalorder %s925_s23, %s1281_s24  ;;  %p1287_p4 = scmp.lt.s32.totalorder %s1281_s24, %s1281_s24 }
  0x2c   :  { %271 = vperm.xlu0 %1232, %v168_v5   ;;  %v157_v19 = vld [vmem:[%s1834_s5 + $0x30] sm:$0xff]  ;;  %v158_v20 = vld [vmem:[%s1834_s5 + $0x38] sm:$0xff]  ;;  %v175_v21 = vld [vmem:[%s1834_s5 + $0xc0] sm:$0xff] }
  0x2d   :  { %191 = vperm.xlu1 %1233, %v152_v6   ;;  %936 = vmatmul.mubr.msk.bf16.vlgmr.msra.gmra.mrb[0].mxu0 %vm104_vm0, %v79_v8  ;;  %v176_v22 = vld [vmem:[%s1834_s5 + $0xc8] sm:$0xff]  ;;  %v159_v23 = vld [vmem:[%s1834_s5 + $0x40] sm:$0xff]  ;;  %v177_v25 = vld [vmem:[%s1834_s5 + $0xd0] sm:$0xff]  ;;  %p1288_p5 = por %p1287_p4, %p1286_p3 }
  0x2e   :  { %v160_v24 = vld [vmem:[%s1834_s5 + $0x48] sm:$0xff]  ;;  %v178_v26 = vld [vmem:[%s1834_s5 + $0xd8] sm:$0xff]  ;;  %v161_v27 = vld [vmem:[%s1834_s5 + $0x50] sm:$0xff]  ;;  %1220 = vmatprep.mubr.msk.bf16.mxu0 %vm1315_vm1, %v1314_v45 }
  0x2f   :  { %v162_v28 = vld [vmem:[%s1834_s5 + $0x58] sm:$0xff]  ;;  %v179_v29 = vld [vmem:[%s1834_s5 + $0xe0] sm:$0xff]  ;;  %v180_v30 = vld [vmem:[%s1834_s5 + $0xe8] sm:$0xff]  ;;  %p1289_p6 = pnand %p1288_p5, %p1282_p2 }
  0x30   :  { %276 = vperm.xlu0 %1232, %v169_v9   ;;  %v163_v31 = vld [vmem:[%s1834_s5 + $0x60] sm:$0xff]  ;;  %v164_v32 = vld [vmem:[%s1834_s5 + $0x68] sm:$0xff]  ;;  %v181_v33 = vld [vmem:[%s1834_s5 + $0xf0] sm:$0xff] }
  0x31   :  { %281 = vperm.xlu1 %1233, %v170_v10   ;;  %v182_v34 = vld [vmem:[%s1834_s5 + $0xf8] sm:$0xff]  ;;  %v165_v35 = vld [vmem:[%s1834_s5 + $0x70] sm:$0xff]  ;;  %v643_v37 = vld [vmem:[%s1840_s11] sm:$0xff] }
  0x32   :  { %v166_v36 = vld [vmem:[%s1834_s5 + $0x78] sm:$0xff]  ;;  %v644_v38 = vld [vmem:[%s1840_s11 + $0x8] sm:$0xff]  ;;  %v645_v39 = vld [vmem:[%s1840_s11 + $0x10] sm:$0xff] }
  0x33   :  { %v646_v40 = vld [vmem:[%s1840_s11 + $0x18] sm:$0xff]  ;;  %v647_v41 = vld [vmem:[%s1840_s11 + $0x20] sm:$0xff]  ;;  %v648_v42 = vld [vmem:[%s1840_s11 + $0x28] sm:$0xff] }
  0x34   :  { %196 = vperm.xlu0 %1232, %v153_v11   ;;  %v649_v43 = vld [vmem:[%s1840_s11 + $0x30] sm:$0xff]  ;;  %v650_v44 = vld [vmem:[%s1840_s11 + $0x38] sm:$0xff]  ;;  %v651_v46 = vld [vmem:[%s1840_s11 + $0x40] sm:$0xff] }
  0x35   :  { %201 = vperm.xlu1 %1233, %v154_v12   ;;  %v652_v47 = vld [vmem:[%s1840_s11 + $0x48] sm:$0xff]  ;;  %v653_v48 = vld [vmem:[%s1840_s11 + $0x50] sm:$0xff]  ;;  %v654_v49 = vld [vmem:[%s1840_s11 + $0x58] sm:$0xff] }
  0x36   :  { %v655_v50 = vld [vmem:[%s1840_s11 + $0x60] sm:$0xff]  ;;  %v656_v51 = vld [vmem:[%s1840_s11 + $0x68] sm:$0xff]  ;;  %v657_v52 = vld [vmem:[%s1840_s11 + $0x70] sm:$0xff] }
  0x37   :  { %v658_v53 = vld [vmem:[%s1840_s11 + $0x78] sm:$0xff]  ;;  %v1581_v57 = vld [vmem:[%s1835_s6] sm:$0x1]  ;;  %v1152_v9 = vld [vmem:[%s1833_s4 + $0x48] sm:$0xff]  }
  0x38   :  { %286 = vperm.xlu0 %1232, %v171_v13   ;;  %v1151_v58 = vld [vmem:[%s1833_s4 + $0x40] sm:$0xff]   ;;  %v1591_v60 = vrot.slane %v1581_v57, %v1576_v56 }
  0x39   :  { %291 = vperm.xlu1 %1233, %v172_v14   ;;  %v1002_v59 = vld [vmem:[%s1833_s4] sm:$0xff]   ;;  %v1035_v61 = vunpack.c.l.bf16 %v1151_v58  ;;  %v1036_v5 = vunpack.c.h.bf16 %v1151_v58 }
  0x3a   :  { %v1003_v62 = vunpack.c.l.bf16 %v1002_v59  ;;  %v1136_v1 = vld [vmem:[%s1832_s3 + $0x40] sm:$0xff]   ;;  %v1004_v6 = vunpack.c.h.bf16 %v1002_v59  ;;  %v1145_v59 = vld [vmem:[%s1833_s4 + $0x10] sm:$0xff]  }
  0x3b   :  { %v938_v2 = vld [vmem:[%s1832_s3] sm:$0xff]   ;;  %v971_v10 = vunpack.c.l.bf16 %v1136_v1 }
  0x3c   :  { %206 = vperm.xlu0 %1232, %v155_v15   ;;  %v939_v11 = vunpack.c.l.bf16 %v938_v2 }
  0x3d   :  { %211 = vperm.xlu1 %1233, %v156_v16   ;;  %v1137_v16 = vld [vmem:[%s1832_s3 + $0x48] sm:$0xff]  }
  0x40   :  { %296 = vperm.xlu0 %1232, %v173_v17   ;;  %v972_v17 = vunpack.c.h.bf16 %v1136_v1 }
  0x41   :  { %301 = vperm.xlu1 %1233, %v174_v18   ;;  %v940_v18 = vunpack.c.h.bf16 %v938_v2 }
  0x44   :  { %216 = vperm.xlu0 %1232, %v157_v19   ;;  %v1039_v19 = vunpack.c.l.bf16 %v1152_v9 }
  0x45   :  { %221 = vperm.xlu1 %1233, %v158_v20   ;;  %v1040_v20 = vunpack.c.h.bf16 %v1152_v9 }
  0x48   :  { %306 = vperm.xlu0 %1232, %v175_v21  }
  0x49   :  { %311 = vperm.xlu1 %1233, %v176_v22  }
  0x4c   :  { %226 = vperm.xlu0 %1232, %v159_v23   ;;  %v1144_v23 = vld [vmem:[%s1833_s4 + $0x8] sm:$0xff]  }
  0x4d   :  { %231 = vperm.xlu1 %1233, %v160_v24  }
  0x50   :  { %316 = vperm.xlu0 %1232, %v177_v25  }
  0x51   :  { %321 = vperm.xlu1 %1233, %v178_v26   ;;  %v975_v26 = vunpack.c.l.bf16 %v1137_v16 }
  0x54   :  { %236 = vperm.xlu0 %1232, %v161_v27  }
  0x55   :  { %241 = vperm.xlu1 %1233, %v162_v28   ;;  %v976_v28 = vunpack.c.h.bf16 %v1137_v16 }
  0x58   :  { %326 = vperm.xlu0 %1232, %v179_v29  }
  0x59   :  { %331 = vperm.xlu1 %1233, %v180_v30  }
  0x5c   :  { %246 = vperm.xlu0 %1232, %v163_v31  }
  0x5d   :  { %251 = vperm.xlu1 %1233, %v164_v32   ;;  %v1129_v32 = vld [vmem:[%s1832_s3 + $0x8] sm:$0xff]  }
  0x60   :  { %336 = vperm.xlu0 %1232, %v181_v33  }
  0x61   :  { %341 = vperm.xlu1 %1233, %v182_v34  }
  0x64   :  { %256 = vperm.xlu0 %1232, %v165_v35   ;;  %v1007_v35 = vunpack.c.l.bf16 %v1144_v23 }
  0x65   :  { %261 = vperm.xlu1 %1233, %v166_v36   ;;  %v1008_v36 = vunpack.c.h.bf16 %v1144_v23 }
  0x68   :  { %662 = vperm.xlu0 %1232, %v643_v37  }
  0x69   :  { %667 = vperm.xlu1 %1233, %v644_v38  }
  0x6c   :  { %672 = vperm.xlu0 %1232, %v645_v39   ;;  %v1153_v39 = vld [vmem:[%s1833_s4 + $0x50] sm:$0xff]  }
  0x6d   :  { %677 = vperm.xlu1 %1233, %v646_v40   ;;  %v1044_v58 = vunpack.c.h.bf16 %v1153_v39 }
  0x70   :  { %682 = vperm.xlu0 %1232, %v647_v41  }
  0x71   :  { %687 = vperm.xlu1 %1233, %v648_v42   ;;  %v943_v42 = vunpack.c.l.bf16 %v1129_v32 }
  0x74   :  { %692 = vperm.xlu0 %1232, %v649_v43  }
  0x75   :  { %697 = vperm.xlu1 %1233, %v650_v44   ;;  %v944_v44 = vunpack.c.h.bf16 %v1129_v32 }
  0x78   :  { %702 = vperm.xlu0 %1232, %v651_v46  }
  0x79   :  { %707 = vperm.xlu1 %1233, %v652_v47  }
  0x7c   :  { %712 = vperm.xlu0 %1232, %v653_v48  }
  0x7d   :  { %717 = vperm.xlu1 %1233, %v654_v49  }
  0x80   :  { %722 = vperm.xlu0 %1232, %v655_v50  }
  0x81   :  { %727 = vperm.xlu1 %1233, %v656_v51   ;;  %v1138_v51 = vld [vmem:[%s1832_s3 + $0x50] sm:$0xff]  }
  0x84   :  { %732 = vperm.xlu0 %1232, %v657_v52   ;;  %v1043_v52 = vunpack.c.l.bf16 %v1153_v39 }
  0x85   :  { %737 = vperm.xlu1 %1233, %v658_v53  }
  0xa7   :  { %v267_v63 = vpop.permute.xlu0 %266 }
  0xa8   :  { %v187_v0 = vpop.permute.xlu1 %186  ;;  %v366_v3 = vmul.f32 %v1591_v60, %v267_v63 }
  0xa9   :  { %v350_v4 = vmul.f32 %v1591_v60, %v187_v0  ;;  %v980_v0 = vunpack.c.h.bf16 %v1138_v51 }
  0xaa   :  { %v526_v7 = vmul.f32 %v1035_v61, %v366_v3 }
  0xab   :  { %v510_v8 = vmul.f32 %v1003_v62, %v350_v4  ;;  %v272_v12 = vpop.permute.xlu0 %271  ;;  %v979_v62 = vunpack.c.l.bf16 %v1138_v51 }
  0xac   :  { %v192_v13 = vpop.permute.xlu1 %191  ;;  %v367_v14 = vmul.f32 %v1591_v60, %v272_v12  ;;  %v558_v24 = vadd.f32 %v971_v10, %v526_v7  ;;  %v1011_v7 = vunpack.c.l.bf16 %v1145_v59  ;;  %v1012_v10 = vunpack.c.h.bf16 %v1145_v59 }
  0xad   :  { %v351_v15 = vmul.f32 %v1591_v60, %v192_v13  ;;  %v542_v25 = vadd.f32 %v939_v11, %v510_v8  ;;  %v1154_v11 = vld [vmem:[%s1833_s4 + $0x58] sm:$0xff]  }
  0xae   :  { %v527_v21 = vmul.f32 %v1036_v5, %v367_v14 }
  0xaf   :  { %v511_v22 = vmul.f32 %v1004_v6, %v351_v15  ;;  %v277_v27 = vpop.permute.xlu0 %276  ;;  %v1130_v6 = vld [vmem:[%s1832_s3 + $0x10] sm:$0xff]  }
  0xb0   :  { %v282_v29 = vpop.permute.xlu1 %281  ;;  %v368_v30 = vmul.f32 %v1591_v60, %v277_v27  ;;  %v559_v33 = vadd.f32 %v972_v17, %v527_v21  ;;  %v947_v13 = vunpack.c.l.bf16 %v1130_v6  ;;  %v948_v15 = vunpack.c.h.bf16 %v1130_v6  ;;  %v1139_v21 = vld [vmem:[%s1832_s3 + $0x58] sm:$0xff]  }
  0xb1   :  { %v369_v31 = vmul.f32 %v1591_v60, %v282_v29  ;;  %v543_v34 = vadd.f32 %v940_v18, %v511_v22  ;;  %v1047_v22 = vunpack.c.l.bf16 %v1154_v11 }
  0xb2   :  { %v528_v37 = vmul.f32 %v1039_v19, %v368_v30  ;;  %v588_v40 = vpack.c.bf16 %v559_v33, %v558_v24  ;;  %v984_v30 = vunpack.c.h.bf16 %v1139_v21 }
  0xb3   :  { %v529_v38 = vmul.f32 %v1040_v20, %v369_v31  ;;  %v580_v41 = vpack.c.bf16 %v543_v34, %v542_v25  ;;  %v197_v43 = vpop.permute.xlu0 %196  ;;  %v1048_v25 = vunpack.c.h.bf16 %v1154_v11 }
  0xb4   :  { %v202_v46 = vpop.permute.xlu1 %201  ;;  %v560_v47 = vadd.f32 %v975_v26, %v528_v37  ;;  %v352_v49 = vmul.f32 %v1591_v60, %v197_v43  ;;  %1173 = vmatprep.subr.bf16.mxu1 %v588_v40  ;;  %v1146_v26 = vld [vmem:[%s1833_s4 + $0x18] sm:$0xff]  }
  0xb5   :  { %v561_v48 = vadd.f32 %v976_v28, %v529_v38  ;;  %v353_v50 = vmul.f32 %v1591_v60, %v202_v46  ;;  %1174 = vmatpush3.bf16.msra.mxu1 %v580_v41  ;;  %v983_v28 = vunpack.c.l.bf16 %v1139_v21  ;;  %v1015_v37 = vunpack.c.l.bf16 %v1146_v26  ;;  %v1155_v41 = vld [vmem:[%s1833_s4 + $0x60] sm:$0xff]  }
  0xb6   :  { %v512_v53 = vmul.f32 %v1007_v35, %v352_v49  ;;  %v1016_v40 = vunpack.c.h.bf16 %v1146_v26  ;;  %v1052_v59 = vunpack.c.h.bf16 %v1155_v41 }
  0xb7   :  { %v513_v54 = vmul.f32 %v1008_v36, %v353_v50  ;;  %v589_v61 = vpack.c.bf16 %v561_v48, %v560_v47  ;;  %v287_v63 = vpop.permute.xlu0 %286  ;;  %v1131_v36 = vld [vmem:[%s1832_s3 + $0x18] sm:$0xff]  }
  0xb8   :  { %v292_v1 = vpop.permute.xlu1 %291  ;;  %v544_v2 = vadd.f32 %v943_v42, %v512_v53  ;;  %v370_v4 = vmul.f32 %v1591_v60, %v287_v63  ;;  %v951_v43 = vunpack.c.l.bf16 %v1131_v36  ;;  %v952_v46 = vunpack.c.h.bf16 %v1131_v36 }
  0xb9   :  { %v545_v3 = vadd.f32 %v944_v44, %v513_v54  ;;  %v371_v5 = vmul.f32 %v1591_v60, %v292_v1  ;;  %1175 = vmatprep.subr.bf16.mxu1 %v589_v61  ;;  %v1051_v53 = vunpack.c.l.bf16 %v1155_v41  ;;  %v1147_v61 = vld [vmem:[%s1833_s4 + $0x20] sm:$0xff]  }
  0xba   :  { %v530_v8 = vmul.f32 %v1043_v52, %v370_v4  ;;  %v1140_v52 = vld [vmem:[%s1832_s3 + $0x60] sm:$0xff]   ;;  %v1020_v11 = vunpack.c.h.bf16 %v1147_v61 }
  0xbb   :  { %v531_v9 = vmul.f32 %v1044_v58, %v371_v5  ;;  %v581_v12 = vpack.c.bf16 %v545_v3, %v544_v2  ;;  %v207_v14 = vpop.permute.xlu0 %206  ;;  %v987_v63 = vunpack.c.l.bf16 %v1140_v52  ;;  %v988_v1 = vunpack.c.h.bf16 %v1140_v52 }
  0xbc   :  { %v212_v16 = vpop.permute.xlu1 %211  ;;  %v562_v17 = vadd.f32 %v979_v62, %v530_v8  ;;  %v354_v19 = vmul.f32 %v1591_v60, %v207_v14  ;;  %v1019_v8 = vunpack.c.l.bf16 %v1147_v61 }
  0xbd   :  { %v563_v18 = vadd.f32 %v980_v0, %v531_v9  ;;  %v355_v20 = vmul.f32 %v1591_v60, %v212_v16  ;;  %1176 = vmatpush3.bf16.msra.mxu1 %v581_v12 }
  0xbe   :  { %v514_v23 = vmul.f32 %v1011_v7, %v354_v19  ;;  %v1132_v7 = vld [vmem:[%s1832_s3 + $0x20] sm:$0xff]  }
  0xbf   :  { %v515_v24 = vmul.f32 %v1012_v10, %v355_v20  ;;  %v590_v27 = vpack.c.bf16 %v563_v18, %v562_v17  ;;  %v297_v29 = vpop.permute.xlu0 %296  ;;  %v955_v14 = vunpack.c.l.bf16 %v1132_v7  ;;  %v956_v16 = vunpack.c.h.bf16 %v1132_v7 }
  0xc0   :  { %v302_v31 = vpop.permute.xlu1 %301  ;;  %v546_v32 = vadd.f32 %v947_v13, %v514_v23  ;;  %v372_v34 = vmul.f32 %v1591_v60, %v297_v29  ;;  %v1156_v13 = vld [vmem:[%s1833_s4 + $0x68] sm:$0xff]  }
  0xc1   :  { %v547_v33 = vadd.f32 %v948_v15, %v515_v24  ;;  %v373_v35 = vmul.f32 %v1591_v60, %v302_v31  ;;  %1177 = vmatprep.subr.bf16.mxu1 %v590_v27  ;;  %v1055_v23 = vunpack.c.l.bf16 %v1156_v13  ;;  %v1056_v26 = vunpack.c.h.bf16 %v1156_v13 }
  0xc2   :  { %v532_v38 = vmul.f32 %v1047_v22, %v372_v34  ;;  %v1141_v22 = vld [vmem:[%s1832_s3 + $0x68] sm:$0xff]  }
  0xc3   :  { %v533_v39 = vmul.f32 %v1048_v25, %v373_v35  ;;  %v582_v42 = vpack.c.bf16 %v547_v33, %v546_v32  ;;  %v217_v44 = vpop.permute.xlu0 %216  ;;  %v991_v29 = vunpack.c.l.bf16 %v1141_v22  ;;  %v992_v31 = vunpack.c.h.bf16 %v1141_v22 }
  0xc4   :  { %v222_v47 = vpop.permute.xlu1 %221  ;;  %v564_v48 = vadd.f32 %v983_v28, %v532_v38  ;;  %v356_v50 = vmul.f32 %v1591_v60, %v217_v44  ;;  %v1148_v28 = vld [vmem:[%s1833_s4 + $0x28] sm:$0xff]  }
  0xc5   :  { %v565_v49 = vadd.f32 %v984_v30, %v533_v39  ;;  %v357_v51 = vmul.f32 %v1591_v60, %v222_v47  ;;  %1178 = vmatpush3.bf16.msra.mxu1 %v582_v42  ;;  %v1023_v38 = vunpack.c.l.bf16 %v1148_v28  ;;  %v1024_v41 = vunpack.c.h.bf16 %v1148_v28 }
  0xc6   :  { %v516_v54 = vmul.f32 %v1015_v37, %v356_v50  ;;  %v1133_v37 = vld [vmem:[%s1832_s3 + $0x28] sm:$0xff]  }
  0xc7   :  { %v517_v58 = vmul.f32 %v1016_v40, %v357_v51  ;;  %v591_v62 = vpack.c.bf16 %v565_v49, %v564_v48  ;;  %v307_v0 = vpop.permute.xlu0 %306  ;;  %v959_v44 = vunpack.c.l.bf16 %v1133_v37  ;;  %v960_v47 = vunpack.c.h.bf16 %v1133_v37 }
  0xc8   :  { %v312_v2 = vpop.permute.xlu1 %311  ;;  %v548_v3 = vadd.f32 %v951_v43, %v516_v54  ;;  %v374_v5 = vmul.f32 %v1591_v60, %v307_v0  ;;  %v1157_v43 = vld [vmem:[%s1833_s4 + $0x70] sm:$0xff]  }
  0xc9   :  { %v549_v4 = vadd.f32 %v952_v46, %v517_v58  ;;  %v375_v6 = vmul.f32 %v1591_v60, %v312_v2  ;;  %1179 = vmatprep.subr.bf16.mxu1 %v591_v62  ;;  %v1059_v54 = vunpack.c.l.bf16 %v1157_v43  ;;  %v1060_v61 = vunpack.c.h.bf16 %v1157_v43 }
  0xca   :  { %v534_v9 = vmul.f32 %v1051_v53, %v374_v5  ;;  %v1142_v53 = vld [vmem:[%s1832_s3 + $0x70] sm:$0xff]  }
  0xcb   :  { %v535_v10 = vmul.f32 %v1052_v59, %v375_v6  ;;  %v583_v12 = vpack.c.bf16 %v549_v4, %v548_v3  ;;  %v227_v15 = vpop.permute.xlu0 %226  ;;  %v995_v0 = vunpack.c.l.bf16 %v1142_v53  ;;  %v996_v2 = vunpack.c.h.bf16 %v1142_v53 }
  0xcc   :  { %v232_v17 = vpop.permute.xlu1 %231  ;;  %v566_v18 = vadd.f32 %v987_v63, %v534_v9  ;;  %v358_v20 = vmul.f32 %v1591_v60, %v227_v15  ;;  %v1149_v63 = vld [vmem:[%s1833_s4 + $0x30] sm:$0xff]  }
  0xcd   :  { %v567_v19 = vadd.f32 %v988_v1, %v535_v10  ;;  %v359_v21 = vmul.f32 %v1591_v60, %v232_v17  ;;  %1180 = vmatpush3.bf16.msra.mxu1 %v583_v12  ;;  %v1027_v9 = vunpack.c.l.bf16 %v1149_v63  ;;  %v1028_v12 = vunpack.c.h.bf16 %v1149_v63 }
  0xce   :  { %v518_v24 = vmul.f32 %v1019_v8, %v358_v20  ;;  %v1134_v8 = vld [vmem:[%s1832_s3 + $0x30] sm:$0xff]  }
  0xcf   :  { %v519_v25 = vmul.f32 %v1020_v11, %v359_v21  ;;  %v592_v27 = vpack.c.bf16 %v567_v19, %v566_v18  ;;  %v317_v30 = vpop.permute.xlu0 %316  ;;  %v963_v15 = vunpack.c.l.bf16 %v1134_v8  ;;  %v964_v17 = vunpack.c.h.bf16 %v1134_v8 }
  0xd0   :  { %v322_v32 = vpop.permute.xlu1 %321  ;;  %v550_v33 = vadd.f32 %v955_v14, %v518_v24  ;;  %v376_v35 = vmul.f32 %v1591_v60, %v317_v30  ;;  %v1158_v14 = vld [vmem:[%s1833_s4 + $0x78] sm:$0xff]  }
  0xd1   :  { %v551_v34 = vadd.f32 %v956_v16, %v519_v25  ;;  %v377_v36 = vmul.f32 %v1591_v60, %v322_v32  ;;  %1181 = vmatprep.subr.bf16.mxu1 %v592_v27  ;;  %v1063_v24 = vunpack.c.l.bf16 %v1158_v14  ;;  %v1064_v27 = vunpack.c.h.bf16 %v1158_v14 }
  0xd2   :  { %v536_v39 = vmul.f32 %v1055_v23, %v376_v35  ;;  %v1143_v23 = vld [vmem:[%s1832_s3 + $0x78] sm:$0xff]  }
  0xd3   :  { %v537_v40 = vmul.f32 %v1056_v26, %v377_v36  ;;  %v584_v42 = vpack.c.bf16 %v551_v34, %v550_v33  ;;  %v237_v46 = vpop.permute.xlu0 %236  ;;  %v999_v30 = vunpack.c.l.bf16 %v1143_v23  ;;  %v1000_v32 = vunpack.c.h.bf16 %v1143_v23 }
  0xd4   :  { %v242_v48 = vpop.permute.xlu1 %241  ;;  %v568_v49 = vadd.f32 %v991_v29, %v536_v39  ;;  %v360_v51 = vmul.f32 %v1591_v60, %v237_v46  ;;  %v1150_v29 = vld [vmem:[%s1833_s4 + $0x38] sm:$0xff]   ;;  %v1716_v39 = vld [vmem:[%s1841_s12] sm:$0x1] }
  0xd5   :  { %v569_v50 = vadd.f32 %v992_v31, %v537_v40  ;;  %v361_v52 = vmul.f32 %v1591_v60, %v242_v48  ;;  %1182 = vmatpush3.bf16.msra.mxu1 %v584_v42  ;;  %v1031_v40 = vunpack.c.l.bf16 %v1150_v29  ;;  %v1032_v43 = vunpack.c.h.bf16 %v1150_v29  ;;  %v1098_v46 = vld [vmem:[%s1839_s10] sm:$0xff]  }
  0xd6   :  { %v520_v58 = vmul.f32 %v1023_v38, %v360_v51  ;;  %v1135_v38 = vld [vmem:[%s1832_s3 + $0x38] sm:$0xff]   ;;  %v1723_v51 = vrot.slane %v1716_v39, %v1576_v56 }
  0xd7   :  { %v521_v59 = vmul.f32 %v1024_v41, %v361_v52  ;;  %v593_v62 = vpack.c.bf16 %v569_v50, %v568_v49  ;;  %v327_v1 = vpop.permute.xlu0 %326  ;;  %v968_v49 = vunpack.c.h.bf16 %v1135_v38 }
  0xd8   :  { %v332_v3 = vpop.permute.xlu1 %331  ;;  %v552_v4 = vadd.f32 %v959_v44, %v520_v58  ;;  %v378_v6 = vmul.f32 %v1591_v60, %v327_v1 }
  0xd9   :  { %v553_v5 = vadd.f32 %v960_v47, %v521_v59  ;;  %v379_v7 = vmul.f32 %v1591_v60, %v332_v3  ;;  %1183 = vmatprep.subr.bf16.mxu1 %v593_v62  ;;  %v967_v47 = vunpack.c.l.bf16 %v1135_v38  ;;  %v1066_v59 = vld [vmem:[%s1838_s9] sm:$0xff]  }
  0xda   :  { %v538_v10 = vmul.f32 %v1059_v54, %v378_v6  ;;  %v1067_v3 = vunpack.c.l.bf16 %v1066_v59 }
  0xdb   :  { %v539_v11 = vmul.f32 %v1060_v61, %v379_v7  ;;  %v585_v13 = vpack.c.bf16 %v553_v5, %v552_v4  ;;  %v247_v16 = vpop.permute.xlu0 %246  ;;  %v1099_v61 = vunpack.c.l.bf16 %v1098_v46  ;;  %v1068_v5 = vunpack.c.h.bf16 %v1066_v59 }
  0xdc   :  { %v252_v18 = vpop.permute.xlu1 %251  ;;  %v570_v19 = vadd.f32 %v995_v0, %v538_v10  ;;  %v362_v21 = vmul.f32 %v1591_v60, %v247_v16  ;;  %v1100_v0 = vunpack.c.h.bf16 %v1098_v46  ;;  %v1159_v10 = vld [vmem:[%s1838_s9 + $0x8] sm:$0xff]   ;;  %v1167_v16 = vld [vmem:[%s1839_s10 + $0x10] sm:$0xff]  }
  0xdd   :  { %v571_v20 = vadd.f32 %v996_v2, %v539_v11  ;;  %v363_v22 = vmul.f32 %v1591_v60, %v252_v18  ;;  %1184 = vmatpush3.bf16.msra.mxu1 %v585_v13  ;;  %v1166_v2 = vld [vmem:[%s1839_s10 + $0x8] sm:$0xff]  }
  0xde   :  { %v522_v25 = vmul.f32 %v1027_v9, %v362_v21  ;;  %v1103_v11 = vunpack.c.l.bf16 %v1166_v2  ;;  %v1104_v14 = vunpack.c.h.bf16 %v1166_v2 }
  0xdf   :  { %v523_v26 = vmul.f32 %v1028_v12, %v363_v22  ;;  %v594_v28 = vpack.c.bf16 %v571_v20, %v570_v19  ;;  %v337_v31 = vpop.permute.xlu0 %336  ;;  %v1072_v19 = vunpack.c.h.bf16 %v1159_v10 }
  0xe0   :  { %v342_v33 = vpop.permute.xlu1 %341  ;;  %v554_v34 = vadd.f32 %v963_v15, %v522_v25  ;;  %v380_v36 = vmul.f32 %v1591_v60, %v337_v31  ;;  %v1160_v25 = vld [vmem:[%s1838_s9 + $0x10] sm:$0xff]   ;;  %v1168_v31 = vld [vmem:[%s1839_s10 + $0x18] sm:$0xff]  }
  0xe1   :  { %v555_v35 = vadd.f32 %v964_v17, %v523_v26  ;;  %v381_v37 = vmul.f32 %v1591_v60, %v342_v33  ;;  %1185 = vmatprep.subr.bf16.mxu1 %v594_v28  ;;  %v1071_v17 = vunpack.c.l.bf16 %v1159_v10  ;;  %v1107_v26 = vunpack.c.l.bf16 %v1167_v16 }
  0xe2   :  { %v540_v41 = vmul.f32 %v1063_v24, %v380_v36 }
  0xe3   :  { %v541_v42 = vmul.f32 %v1064_v27, %v381_v37  ;;  %v586_v44 = vpack.c.bf16 %v555_v35, %v554_v34  ;;  %v257_v48 = vpop.permute.xlu0 %256  ;;  %v1076_v34 = vunpack.c.h.bf16 %v1160_v25 }
  0xe4   :  { %v262_v50 = vpop.permute.xlu1 %261  ;;  %v572_v52 = vadd.f32 %v999_v30, %v540_v41  ;;  %v364_v54 = vmul.f32 %v1591_v60, %v257_v48  ;;  %v1108_v30 = vunpack.c.h.bf16 %v1167_v16  ;;  %v1161_v41 = vld [vmem:[%s1838_s9 + $0x18] sm:$0xff]   ;;  %v1169_v48 = vld [vmem:[%s1839_s10 + $0x20] sm:$0xff]  }
  0xe5   :  { %v573_v53 = vadd.f32 %v1000_v32, %v541_v42  ;;  %v365_v58 = vmul.f32 %v1591_v60, %v262_v50  ;;  %1186 = vmatpush3.bf16.msra.mxu1 %v586_v44  ;;  %v1075_v32 = vunpack.c.l.bf16 %v1160_v25  ;;  %v1111_v42 = vunpack.c.l.bf16 %v1168_v31 }
  0xe6   :  { %v524_v62 = vmul.f32 %v1031_v40, %v364_v54 }
  0xe7   :  { %v525_v63 = vmul.f32 %v1032_v43, %v365_v58  ;;  %v595_v1 = vpack.c.bf16 %v573_v53, %v572_v52  ;;  %v663_v4 = vpop.permute.xlu0 %662  ;;  %v1080_v52 = vunpack.c.h.bf16 %v1161_v41 }
  0xe8   :  { %v668_v6 = vpop.permute.xlu1 %667  ;;  %v556_v7 = vadd.f32 %v967_v47, %v524_v62  ;;  %v746_v8 = vmul.f32 %v1723_v51, %v663_v4  ;;  %v1112_v47 = vunpack.c.h.bf16 %v1168_v31  ;;  %v1162_v62 = vld [vmem:[%s1838_s9 + $0x20] sm:$0xff]   ;;  %v1170_v4 = vld [vmem:[%s1839_s10 + $0x28] sm:$0xff]  }
  0xe9   :  { %v557_v60 = vadd.f32 %v968_v49, %v525_v63  ;;  %v747_v9 = vmul.f32 %v1723_v51, %v668_v6  ;;  %1187 = vmatprep.subr.bf16.mxu1 %v595_v1  ;;  %v1079_v49 = vunpack.c.l.bf16 %v1161_v41  ;;  %v1115_v63 = vunpack.c.l.bf16 %v1169_v48 }
  0xea   :  { %v826_v12 = vmul.f32 %v1099_v61, %v746_v8 }
  0xeb   :  { %v827_v13 = vmul.f32 %v1100_v0, %v747_v9  ;;  %v587_v15 = vpack.c.bf16 %v557_v60, %v556_v7  ;;  %v673_v18 = vpop.permute.xlu0 %672  ;;  %v1084_v7 = vunpack.c.h.bf16 %v1162_v62 }
  0xec   :  { %v678_v20 = vpop.permute.xlu1 %677  ;;  %v842_v21 = vadd.f32 %v1067_v3, %v826_v12  ;;  %v748_v23 = vmul.f32 %v1723_v51, %v673_v18  ;;  %v1116_v3 = vunpack.c.h.bf16 %v1169_v48  ;;  %v1163_v12 = vld [vmem:[%s1838_s9 + $0x28] sm:$0xff]   ;;  %v1171_v18 = vld [vmem:[%s1839_s10 + $0x30] sm:$0xff]  }
  0xed   :  { %v843_v22 = vadd.f32 %v1068_v5, %v827_v13  ;;  %v749_v24 = vmul.f32 %v1723_v51, %v678_v20  ;;  %1188 = vmatpush3.bf16.msra.mxu1 %v587_v15  ;;  %v1083_v5 = vunpack.c.l.bf16 %v1162_v62  ;;  %v1119_v13 = vunpack.c.l.bf16 %v1170_v4 }
  0xee   :  { %v828_v28 = vmul.f32 %v1103_v11, %v748_v23  ;;  %v1087_v20 = vunpack.c.l.bf16 %v1163_v12 }
  0xef   :  { %v863_v27 = vpack.c.bf16 %v843_v22, %v842_v21  ;;  %v829_v29 = vmul.f32 %v1104_v14, %v749_v24  ;;  %v683_v33 = vpop.permute.xlu0 %682  ;;  %v1088_v22 = vunpack.c.h.bf16 %v1163_v12  ;;  %v90_v24 = vsub.s32 1, %v1573_v55 }
  0xf0   :  { %v688_v35 = vpop.permute.xlu1 %687  ;;  %v844_v36 = vadd.f32 %v1071_v17, %v828_v28  ;;  %v750_v38 = vmul.f32 %v1723_v51, %v683_v33  ;;  %v1120_v17 = vunpack.c.h.bf16 %v1170_v4  ;;  %v1124_v55 = vunpack.c.h.bf16 %v1171_v18 }
  0xf1   :  { %v845_v37 = vadd.f32 %v1072_v19, %v829_v29  ;;  %v751_v40 = vmul.f32 %v1723_v51, %v688_v35  ;;  %1205 = vmatpush3.bf16.msra.mxu0 %v863_v27  ;;  %v82_v19 = vld [vmem:[%s1831_s2] sm:$0x3]  ;;  %v1164_v29 = vld [vmem:[%s1838_s9 + $0x30] sm:$0xff]   ;;  %v1172_v35 = vld [vmem:[%s1839_s10 + $0x38] sm:$0xff]  }
  0xf2   :  { %1206 = vmatprep.subr.bf16.mxu0 %v1314_v45  ;;  %v830_v44 = vmul.f32 %v1107_v26, %v750_v38  ;;  %v87_v31 = vrot.slane %v82_v19, %v1576_v56  ;;  %v1092_v38 = vunpack.c.h.bf16 %v1164_v29  ;;  %v91_v41 = vrot.slane %v82_v19, %v90_v24 }
  0xf3   :  { %v864_v43 = vpack.c.bf16 %v845_v37, %v844_v36  ;;  %v831_v46 = vmul.f32 %v1108_v30, %v751_v40  ;;  %v693_v50 = vpop.permute.xlu0 %692  ;;  %v1123_v30 = vunpack.c.l.bf16 %v1171_v18  ;;  %v1091_v36 = vunpack.c.l.bf16 %v1164_v29  ;;  %v574_v18 = vld [vmem:[%s1836_s7] sm:$0x1] }
  0xf4   :  { %v698_v53 = vpop.permute.xlu1 %697  ;;  %v846_v54 = vadd.f32 %v1075_v32, %v830_v44  ;;  %v752_v59 = vmul.f32 %v1723_v51, %v693_v50  ;;  %v858_v29 = vld [vmem:[%s1842_s13] sm:$0x1] }
  0xf5   :  { %v847_v58 = vadd.f32 %v1076_v34, %v831_v46  ;;  %v753_v61 = vmul.f32 %v1723_v51, %v698_v53  ;;  %1207 = vmatpush3.bf16.msra.mxu0 %v864_v43 }
  0xf6   :  { %1208 = vmatprep.subr.bf16.mxu0 %v1314_v45  ;;  %v832_v1 = vmul.f32 %v1111_v42, %v752_v59 }
  0xf7   :  { %v865_v0 = vpack.c.bf16 %v847_v58, %v846_v54  ;;  %v833_v2 = vmul.f32 %v1112_v47, %v753_v61  ;;  %v703_v6 = vpop.permute.xlu0 %702  ;;  %v1165_v47 = vld [vmem:[%s1838_s9 + $0x38] sm:$0xff]  }
  0xf8   :  { %v708_v60 = vpop.permute.xlu1 %707  ;;  %v848_v8 = vadd.f32 %v1079_v49, %v832_v1  ;;  %v754_v10 = vmul.f32 %v1723_v51, %v703_v6  ;;  %v1127_v49 = vunpack.c.l.bf16 %v1172_v35  ;;  %v1095_v61 = vunpack.c.l.bf16 %v1165_v47 }
  0xf9   :  { %v849_v9 = vadd.f32 %v1080_v52, %v833_v2  ;;  %v755_v11 = vmul.f32 %v1723_v51, %v708_v60  ;;  %1209 = vmatpush3.bf16.msra.mxu0 %v865_v0  ;;  %v1096_v6 = vunpack.c.h.bf16 %v1165_v47 }
  0xfa   :  { %1210 = vmatprep.subr.bf16.mxu0 %v1314_v45  ;;  %v834_v15 = vmul.f32 %v1115_v63, %v754_v10  ;;  %v1128_v63 = vunpack.c.h.bf16 %v1172_v35 }
  0xfb   :  { %v866_v14 = vpack.c.bf16 %v849_v9, %v848_v8  ;;  %v835_v16 = vmul.f32 %v1116_v3, %v755_v11  ;;  %v713_v21 = vpop.permute.xlu0 %712 }
  0xfc   :  { %v718_v23 = vpop.permute.xlu1 %717  ;;  %v850_v25 = vadd.f32 %v1083_v5, %v834_v15  ;;  %v756_v27 = vmul.f32 %v1723_v51, %v713_v21 }
  0xfd   :  { %v851_v26 = vadd.f32 %v1084_v7, %v835_v16  ;;  %v757_v28 = vmul.f32 %v1723_v51, %v718_v23  ;;  %1211 = vmatpush3.bf16.msra.mxu0 %v866_v14 }
  0xfe   :  { %1212 = vmatprep.subr.bf16.mxu0 %v1314_v45  ;;  %v836_v33 = vmul.f32 %v1119_v13, %v756_v27 }
  0xff   :  { %v867_v32 = vpack.c.bf16 %v851_v26, %v850_v25  ;;  %v837_v34 = vmul.f32 %v1120_v17, %v757_v28  ;;  %v723_v37 = vpop.permute.xlu0 %722 }
 0x100   :  { %v728_v40 = vpop.permute.xlu1 %727  ;;  %v852_v42 = vadd.f32 %v1087_v20, %v836_v33  ;;  %v758_v44 = vmul.f32 %v1723_v51, %v723_v37  ;;  %v142_v48 = vpop.f32.mrb[0].mxu0 }
 0x101   :  { %v853_v43 = vadd.f32 %v1088_v22, %v837_v34  ;;  %v759_v46 = vmul.f32 %v1723_v51, %v728_v40  ;;  %1213 = vmatpush3.bf16.msra.mxu0 %v867_v32  ;;  %v143_v54 = vadd.f32 %v142_v48, %v87_v31  ;;  %v144_v58 = vpop.f32.mrb[1].mxu0 }
 0x102   :  { %1214 = vmatprep.subr.bf16.mxu0 %v1314_v45  ;;  %v838_v52 = vmul.f32 %v1123_v30, %v758_v44  ;;  %v145_v59 = vadd.f32 %v144_v58, %v91_v41  ;;  %v146_v5 = vpop.f32.mrb[2].mxu0 }
 0x103   :  { %v868_v50 = vpack.c.bf16 %v853_v43, %v852_v42  ;;  %v839_v53 = vmul.f32 %v1124_v55, %v759_v46  ;;  %v733_v62 = vpop.permute.xlu0 %732  ;;  %v149_v3 = vmax.f32 %v143_v54, 0.0  ;;  %v147_v60 = vpop.f32.mrb[3].mxu0 }
 0x104   :  { %v738_v0 = vpop.permute.xlu1 %737  ;;  %v854_v1 = vadd.f32 %v1091_v36, %v838_v52  ;;  %v760_v4 = vmul.f32 %v1723_v51, %v733_v62  ;;  %v150_v8 = vmax.f32 %v145_v59, 0.0 }
 0x105   :  { %v855_v2 = vadd.f32 %v1092_v38, %v839_v53  ;;  %1215 = vmatpush3.bf16.msra.mxu0 %v868_v50  ;;  %v761_v7 = vmul.f32 %v1723_v51, %v738_v0  ;;  %v578_v13 = vpack.c.bf16 %v149_v3, %v149_v3  ;;  %v575_v51 = vld [vmem:[%s1837_s8] sm:$0x1] }
 0x106   :  { %1216 = vmatprep.subr.bf16.mxu0 %v1314_v45  ;;  %v840_v10 = vmul.f32 %v1127_v49, %v760_v4  ;;  %v579_v12 = vpack.c.bf16 %v150_v8, %v150_v8  ;;  %v576_v17 = vmul.f32 %v575_v51, %v1581_v57  ;;  %v859_v57 = vld [vmem:[%s1843_s14] sm:$0x1] }
 0x107   :  { %v869_v9 = vpack.c.bf16 %v855_v2, %v854_v1  ;;  %v841_v11 = vmul.f32 %v1128_v63, %v761_v7  ;;  %v860_v28 = vmul.f32 %v859_v57, %v1716_v39 }
 0x108   :  { %v856_v14 = vadd.f32 %v1095_v61, %v840_v10  ;;  %634 = vmatprep.mubr.bf16.mxu1 %v579_v12  ;;  %v577_v19 = vadd.f32 %v576_v17, %v574_v18 }
 0x109   :  { %1217 = vmatpush3.bf16.msra.mxu0 %v869_v9  ;;  %v857_v15 = vadd.f32 %v1096_v6, %v841_v11  ;;  %635 = vmatmul.mubr.bf16.vlgmr.msra.gmra.mrb[0].mxu1 %v578_v13  ;;  %v861_v30 = vadd.f32 %v860_v28, %v858_v29 }
 0x10a   :  { %1218 = vmatprep.subr.bf16.mxu0 %v1314_v45  ;;  %v600_v21 = vrot.slane %v577_v19, %v1576_v56 }
 0x10b   :  { %v870_v16 = vpack.c.bf16 %v857_v15, %v856_v14  ;;  %v875_v31 = vrot.slane %v861_v30, %v1576_v56 }
 0x10d   :  { %1219 = vmatpush3.bf16.msra.mxu0 %v870_v16 }
 0x1dc   :  { %v1189_v20 = vpop.f32.mrb[0].mxu1 }
 0x1dd   :  { %v1190_v22 = vpop.f32.mrb[1].mxu1 }
 0x1de   :  { %v1191_v23 = vadd.f32 %v1190_v22, %v1189_v20  ;;  %v1192_v24 = vpop.f32.mrb[2].mxu1 }
 0x1df   :  { %v1193_v25 = vpop.f32.mrb[3].mxu1 }
 0x1e0   :  { %v637_v26 = vadd.f32 %v1191_v23, %v600_v21 }
 0x1e2   :  { %v642_v45 = vmax.f32 %v637_v26, 0.0 }
 0x1e4   :  { %v862_v27 = vpack.c.bf16 %v642_v45, %v642_v45 }
 0x1e6   :  { %1221 = vmatmul.mubr.bf16.vlgmr.msra.gmra.mrb[4].mxu0 %v862_v27 }
 0x2b9   :  { %v911_v32 = vpop.f32.mrb[4].mxu0 }
 0x2ba   :  { %v912_v33 = vadd.f32 %v911_v32, %v875_v31  ;;  %v1222_v34 = vpop.f32.mrb[5].mxu0 }
 0x2bb   :  { %v914_v55 = vpop.f32.mrb[6].mxu0 }
 0x2bc   :  { %917 = vst [vmem:[#allocation7] sm:$0xff] %v912_v33  ;;  %v1223_v35 = vpop.f32.mrb[7].mxu0 }
 0x2bd   :  { %1292 = shalt.err (!%p1289_p6)
}
 0x2be   :  { %s1293_s25 = scalar_lea.hbm %s1844_s15, 128 }
 0x2bf   :  { %p1294_p7 = scmp.ne.s32.totalorder %s1844_s15, %s1293_s25  ;;  %p1297_p8 = scmp.lt.u32.totalorder %s1293_s25, %s1844_s15 }
 0x2c1   :  { %p1299_p9 = pnand %p1297_p8, %p1294_p7 }
 0x2c3   :  { %1302 = shalt.err (!%p1299_p9)
}
 0x2c4   :  { %927 = dma.vmem_to_hbm [thread:$0]  %s925_s23, 128, %s1844_s15, [#allocation4]  }
 0x2c5   :  { %1307 = dma.done.wait [#allocation4], 128  }
 0x2c6   :  { %1308 = vsyncadd [#allocation4], 4294967168 }
 0x2c7   :  { %931 = vsyncpa [#allocation3], 1 }
 0x2c8   :  { %932 = vsyncpa [#allocation6], 1 }
 0x2c9   :  { %933 = vsyncpa [#allocation4], 1 }

</bundles_post_ra>
